<compile_context>
chip_gen: v6e
topology: v6e:2x2x1
jax: 0.10.0
libtpu: 0.0.40
codegen_flags: <defaults>
</compile_context>

<pallas_src>
import functools

import jax
import jax.numpy as jnp
from jax.experimental import pallas as pl
from jax.experimental.pallas import tpu as pltpu


_VMEM_LIMIT_BYTES = 48 * 1024 * 1024   # explicit scoped-VMEM limit (all gens)
_VMEM_BUDGET_BYTES = 28 * 1024 * 1024  # target kernel footprint for tiling


def _choose_tile_rows(N, D, itemsize, tile_rows):
    """Row-tile sized against the real (lane-padded) VMEM footprint."""
    lanes = ((D + 127) // 128) * 128          # each input tile pads to 128 lanes
    if tile_rows is None:
        # 2 inputs x 2 pipeline buffers + 2 tile-sized f32 upcast temporaries
        # + lane-padded aux (h/m) buffers.
        per_row = 4 * lanes * itemsize + 2 * lanes * 4 + 2 * 128 * 4
        tile_rows = max(8, _VMEM_BUDGET_BYTES // per_row)
    tile_n = int(min(int(tile_rows), N))
    if tile_n < N:
        tile_n = max(8, (tile_n // 8) * 8)    # sublane-aligned partial tiles
        tile_n = min(tile_n, N)
    return tile_n


def _row_mask_contrib(contrib, c, i, tiles_per_core, tile_n, n_valid):
    """Zero contributions from rows outside the real batch (ragged/dup tiles)."""
    t = c * tiles_per_core + i
    row = jax.lax.broadcasted_iota(jnp.int32, (tile_n, 1), 0) + t * tile_n
    return jnp.where(row < n_valid, contrib, 0.0)


def _drloss_default_kernel(feat_ref, target_ref, out_ref, acc_ref, *,
                           n_valid, tile_n, tiles_per_core, scale, need_mask):
    """Specialized kernel for h_norm2 = m_norm2 = None (h2 = m2 = 1)."""
    c = pl.program_id(0)
    i = pl.program_id(1)

    @pl.when(i == 0)
    def _init():
        acc_ref[...] = jnp.zeros_like(acc_ref)

    # Native-dtype DMA (bf16 halves HBM bytes); upcast in VMEM so the
    # dot product and accumulation stay exactly f32.
    feat = feat_ref[...].astype(jnp.float32)
    tgt = target_ref[...].astype(jnp.float32)
    dot = jnp.sum(feat * tgt, axis=1, keepdims=True)        # (tile_n, 1) f32

    diff = dot - 1.0                                        # m2 * h2 == 1
    contrib = diff * diff
    if need_mask:
        contrib = _row_mask_contrib(contrib, c, i, tiles_per_core,
                                    tile_n, n_valid)
    acc_ref[...] += jnp.sum(contrib, keepdims=True)         # (1, 1) f32

    @pl.when(i == pl.num_programs(1) - 1)
    def _finalize():
        # scale = 0.5 * loss_weight / N; per-core partial, summed in wrapper.
        out_ref[0] = jnp.broadcast_to(acc_ref[...] * scale, (8, 128))


def _drloss_hm_kernel(feat_ref, target_ref, aux_ref, out_ref, acc_ref, *,
                      n_valid, tile_n, tiles_per_core, scale, need_mask):
    """General kernel; aux packs [m2*h2, 1/h2] as a single (N, 2) f32 array."""
    c = pl.program_id(0)
    i = pl.program_id(1)

    @pl.when(i == 0)
    def _init():
        acc_ref[...] = jnp.zeros_like(acc_ref)

    feat = feat_ref[...].astype(jnp.float32)
    tgt = target_ref[...].astype(jnp.float32)
    dot = jnp.sum(feat * tgt, axis=1, keepdims=True)        # (tile_n, 1) f32

    mh = aux_ref[:, 0:1]                                    # m2 * h2
    inv_h = aux_ref[:, 1:2]                                 # 1 / h2 (precomputed)
    diff = dot - mh
    contrib = diff * diff * inv_h
    if need_mask:
        # Garbage aux/feat rows in the ragged tile may produce NaN/inf in
        # `contrib`; the select picks 0.0 there, so nothing propagates.
        contrib = _row_mask_contrib(contrib, c, i, tiles_per_core,
                                    tile_n, n_valid)
    acc_ref[...] += jnp.sum(contrib, keepdims=True)

    @pl.when(i == pl.num_programs(1) - 1)
    def _finalize():
        out_ref[0] = jnp.broadcast_to(acc_ref[...] * scale, (8, 128))


def drloss(feat, target, h_norm2=None, m_norm2=None,
           loss_weight=1.0, reduction="mean", reg_lambda=0.0,
           tile_rows=None, num_cores=2):
    assert reduction == "mean"
    # reg_lambda is unused in the reference forward pass as well.
    N, D = feat.shape
    assert target.shape == (N, D)

    itemsize = max(jnp.dtype(feat.dtype).itemsize,
                   jnp.dtype(target.dtype).itemsize)
    tile_n = _choose_tile_rows(N, D, itemsize, tile_rows)
    num_tiles = pl.cdiv(N, tile_n)
    num_cores = int(num_cores) if num_tiles >= 2 else 1
    tiles_per_core = pl.cdiv(num_tiles, num_cores)
    total_tiles = num_cores * tiles_per_core
    need_mask = (total_tiles * tile_n) != N
    scale = 0.5 * float(loss_weight) / float(N)
    last_block = num_tiles - 1

    def row_block(c, i):
        # Clamp so duplicate tiles from the core split never address past the
        # array; their contributions are zeroed by the in-kernel row mask.
        t = c * tiles_per_core + i
        return (jnp.minimum(t, last_block), 0)

    feat_spec = pl.BlockSpec((tile_n, D), row_block)
    tgt_spec = pl.BlockSpec((tile_n, D), row_block)
    # Full (8,128) output tiles per core: aligned, lane-dense single store.
    out_spec = pl.BlockSpec((1, 8, 128), lambda c, i: (c, 0, 0))

    common = dict(n_valid=N, tile_n=tile_n, tiles_per_core=tiles_per_core,
                  scale=scale, need_mask=need_mask)

    if h_norm2 is None and m_norm2 is None:
        kernel = functools.partial(_drloss_default_kernel, **common)
        in_specs = [feat_spec, tgt_spec]
        args = (feat, target)
    else:
        h2 = (jnp.ones((N,), jnp.float32) if h_norm2 is None
              else h_norm2.reshape(N).astype(jnp.float32))
        m2 = (jnp.ones((N,), jnp.float32) if m_norm2 is None
              else m_norm2.reshape(N).astype(jnp.float32))
        aux = jnp.stack([m2 * h2, 1.0 / h2], axis=1)        # (N, 2) f32, packed
        kernel = functools.partial(_drloss_hm_kernel, **common)
        in_specs = [feat_spec, tgt_spec, pl.BlockSpec((tile_n, 2), row_block)]
        args = (feat, target, aux)

    out = pl.pallas_call(
        kernel,
        out_shape=jax.ShapeDtypeStruct((num_cores, 8, 128), jnp.float32),
        grid_spec=pltpu.PrefetchScalarGridSpec(
            num_scalar_prefetch=0,
            grid=(num_cores, tiles_per_core),
            in_specs=in_specs,
            out_specs=out_spec,
            scratch_shapes=[pltpu.VMEM((1, 1), jnp.float32)],
        ),
        compiler_params=pltpu.CompilerParams(
            dimension_semantics=("parallel", "arbitrary"),
            vmem_limit_bytes=_VMEM_LIMIT_BYTES),
    )(*args)
    # Sum the per-core partials (a no-op add when num_cores == 1).
    return jnp.sum(out[:, 0, 0])


def _drloss_ref(feat, target, h_norm2=None, m_norm2=None, loss_weight=1.0):
    feat = feat.astype(jnp.float32)
    target = target.astype(jnp.float32)
    dot = jnp.sum(feat * target, axis=1)
    if h_norm2 is None:
        h_norm2 = jnp.ones_like(dot)
    if m_norm2 is None:
        m_norm2 = jnp.ones_like(dot)
    h_norm2 = h_norm2.reshape(-1).astype(jnp.float32)
    m_norm2 = m_norm2.reshape(-1).astype(jnp.float32)
    loss = 0.5 * jnp.mean((dot - m_norm2 * h_norm2) ** 2 / h_norm2)
    return loss * loss_weight


if __name__ == "__main__":
    key = jax.random.PRNGKey(0)
    k1, k2, k3, k4, k5 = jax.random.split(key, 5)

    # --- 1) Small f32 case, default path (h_norm2 = m_norm2 = None) ---------
    N, D = 8, 32
    feat = jax.random.normal(k1, (N, D), dtype=jnp.float32)
    target = jax.random.normal(k2, (N, D), dtype=jnp.float32)
    feat = feat / jnp.linalg.norm(feat, axis=1, keepdims=True)
    target = target / jnp.linalg.norm(target, axis=1, keepdims=True)

    out = jax.block_until_ready(drloss(feat, target, loss_weight=1.0))
    ref = _drloss_ref(feat, target, loss_weight=1.0)
    assert jnp.allclose(out, ref, rtol=1e-5, atol=1e-6), (out, ref)

    # --- 2) Explicit h_norm2 / m_norm2 (single tile) --------------------------
    h2 = 1.0 + 0.1 * jax.random.uniform(k3, (N,), dtype=jnp.float32)
    m2 = jnp.full((N,), 0.9, dtype=jnp.float32)
    out2 = jax.block_until_ready(drloss(feat, target, h2, m2, loss_weight=0.5))
    ref2 = _drloss_ref(feat, target, h2, m2, loss_weight=0.5)
    assert jnp.allclose(out2, ref2, rtol=1e-5, atol=1e-6), (out2, ref2)

    # --- 3) Multi-tile grid, 2-core split, ragged (masked) last tile ----------
    N2, D2 = 200, 64
    feat2 = jax.random.normal(k4, (N2, D2), dtype=jnp.float32)
    target2 = jax.random.normal(k5, (N2, D2), dtype=jnp.float32)
    out3 = jax.block_until_ready(
        drloss(feat2, target2, loss_weight=1.0, tile_rows=64))  # grid (2, 2)
    ref3 = _drloss_ref(feat2, target2, loss_weight=1.0)
    assert jnp.allclose(out3, ref3, rtol=1e-5, atol=1e-6), (out3, ref3)

    # --- 4) Explicit h/m on the multi-tile, ragged, 2-core grid ---------------
    h2b = 1.0 + 0.1 * jax.random.uniform(k3, (N2,), dtype=jnp.float32)
    m2b = jnp.full((N2,), 0.9, dtype=jnp.float32)
    out4 = jax.block_until_ready(
        drloss(feat2, target2, h2b, m2b, loss_weight=0.7, tile_rows=64))
    ref4 = _drloss_ref(feat2, target2, h2b, m2b, loss_weight=0.7)
    assert jnp.allclose(out4, ref4, rtol=1e-5, atol=1e-6), (out4, ref4)

    # --- 5) Native bf16 inputs (DMA'd as bf16, upcast + f32 accumulate in-kernel)
    feat_bf = feat2.astype(jnp.bfloat16)
    target_bf = target2.astype(jnp.bfloat16)
    out5 = jax.block_until_ready(
        drloss(feat_bf, target_bf, loss_weight=1.0, tile_rows=64))
    ref5 = _drloss_ref(feat_bf, target_bf, loss_weight=1.0)
    assert jnp.allclose(out5, ref5, rtol=1e-4, atol=1e-5), (out5, ref5)

    print("KERNEL_OK")
</pallas_src>

<mosaic_0001>
module attributes {stable_mosaic.version = 11 : i64} {
  func.func @_drloss_default_kernel(%arg0: i32, %arg1: i32, %arg2: memref<8x32xf32, #tpu.memory_space<vmem>>, %arg3: memref<8x32xf32, #tpu.memory_space<vmem>>, %arg4: memref<1x8x128xf32, #tpu.memory_space<vmem>>, %arg5: memref<1x1xf32, #tpu.memory_space<vmem>>) attributes {dimension_semantics = [#tpu.dimension_semantics<parallel>, #tpu.dimension_semantics<arbitrary>], iteration_bounds = array<i64: 1, 1>, scalar_prefetch = 0 : i64, scratch_operands = 1 : i64, tpu.core_type = #tpu.core_type<tc>, window_params = [{transform_indices = @transform_0, window_bounds = array<i64: 8, 32>}, {transform_indices = @transform_1, window_bounds = array<i64: 8, 32>}, {transform_indices = @transform_2, window_bounds = array<i64: 1, 8, 128>}]} {
    %c0_i32 = arith.constant 0 : i32
    %0 = arith.cmpi eq, %arg1, %c0_i32 : i32
    %1 = arith.extui %0 : i1 to i32
    %c0_i32_0 = arith.constant 0 : i32
    %2 = arith.cmpi ne, %1, %c0_i32_0 : i32
    scf.if %2 {
      %cst_12 = arith.constant 0.000000e+00 : f32
      %22 = vector.broadcast %cst_12 : f32 to vector<1x1xf32>
      %c0_13 = arith.constant 0 : index
      %c0_14 = arith.constant 0 : index
      %23 = vector.load %arg5[%c0_13, %c0_14] : memref<1x1xf32, #tpu.memory_space<vmem>>, vector<1x1xf32>
      tpu.vector_store %arg5[%c0_13, %c0_14], %22 {strides = array<i32>} : memref<1x1xf32, #tpu.memory_space<vmem>>, vector<1x1xf32>,
    } else {
    }
    %c0 = arith.constant 0 : index
    %c0_1 = arith.constant 0 : index
    %3 = vector.load %arg2[%c0, %c0_1] : memref<8x32xf32, #tpu.memory_space<vmem>>, vector<8x32xf32>
    %c0_2 = arith.constant 0 : index
    %c0_3 = arith.constant 0 : index
    %4 = vector.load %arg3[%c0_2, %c0_3] : memref<8x32xf32, #tpu.memory_space<vmem>>, vector<8x32xf32>
    %5 = arith.mulf %3, %4 : vector<8x32xf32>
    %cst = arith.constant dense<0.000000e+00> : vector<8xf32>
    %6 = vector.multi_reduction <add>, %5, %cst [1] : vector<8x32xf32> to vector<8xf32>
    %7 = vector.shape_cast %6 : vector<8xf32> to vector<8x1xf32>
    %cst_4 = arith.constant 1.000000e+00 : f32
    %8 = vector.broadcast %cst_4 : f32 to vector<8x1xf32>
    %9 = arith.subf %7, %8 : vector<8x1xf32>
    %10 = arith.mulf %9, %9 : vector<8x1xf32>
    %c0_5 = arith.constant 0 : index
    %c0_6 = arith.constant 0 : index
    %11 = vector.load %arg5[%c0_5, %c0_6] : memref<1x1xf32, #tpu.memory_space<vmem>>, vector<1x1xf32>
    %12 = vector.shape_cast %10 : vector<8x1xf32> to vector<1x8x1xf32>
    %cst_7 = arith.constant dense<0.000000e+00> : vector<1xf32>
    %13 = vector.multi_reduction <add>, %12, %cst_7 [1, 2] : vector<1x8x1xf32> to vector<1xf32>
    %14 = vector.shape_cast %13 : vector<1xf32> to vector<1x1x1xf32>
    %15 = vector.extract %14[0, 0, 0] : f32 from vector<1x1x1xf32>
    %16 = vector.broadcast %15 : f32 to vector<1x1xf32>
    %17 = arith.addf %11, %16 : vector<1x1xf32>
    %c0_8 = arith.constant 0 : index
    %c0_9 = arith.constant 0 : index
    %18 = vector.load %arg5[%c0_8, %c0_9] : memref<1x1xf32, #tpu.memory_space<vmem>>, vector<1x1xf32>
    tpu.vector_store %arg5[%c0_8, %c0_9], %17 {strides = array<i32>} : memref<1x1xf32, #tpu.memory_space<vmem>>, vector<1x1xf32>,
    %c0_i32_10 = arith.constant 0 : i32
    %19 = arith.cmpi eq, %arg1, %c0_i32_10 : i32
    %20 = arith.extui %19 : i1 to i32
    %c0_i32_11 = arith.constant 0 : i32
    %21 = arith.cmpi ne, %20, %c0_i32_11 : i32
    scf.if %21 {
      %c0_12 = arith.constant 0 : index
      %c0_13 = arith.constant 0 : index
      %22 = vector.load %arg5[%c0_12, %c0_13] : memref<1x1xf32, #tpu.memory_space<vmem>>, vector<1x1xf32>
      %cst_14 = arith.constant 6.250000e-02 : f32
      %23 = vector.broadcast %cst_14 : f32 to vector<1x1xf32>
      %24 = arith.mulf %22, %23 : vector<1x1xf32>
      %25 = vector.shape_cast %24 : vector<1x1xf32> to vector<1x1xf32>
      %26 = vector.broadcast %25 : vector<1x1xf32> to vector<8x128xf32>
      %c0_15 = arith.constant 0 : index
      %c0_16 = arith.constant 0 : index
      %c0_17 = arith.constant 0 : index
      %27 = vector.load %arg4[%c0_15, %c0_16, %c0_17] : memref<1x8x128xf32, #tpu.memory_space<vmem>>, vector<1x8x128xf32>
      %28 = vector.shape_cast %27 : vector<1x8x128xf32> to vector<8x128xf32>
      %29 = vector.shape_cast %26 : vector<8x128xf32> to vector<1x8x128xf32>
      tpu.vector_store %arg4[%c0_15, %c0_16, %c0_17], %29 {strides = array<i32>} : memref<1x8x128xf32, #tpu.memory_space<vmem>>, vector<1x8x128xf32>,
    } else {
    }
    return
  }
  func.func @transform_0(%arg0: i32, %arg1: i32) -> (i32, i32) {
    %c1_i32 = arith.constant 1 : i32
    %0 = arith.muli %arg0, %c1_i32 : i32
    %1 = arith.addi %0, %arg1 : i32
    %c0_i32 = arith.constant 0 : i32
    %2 = arith.minsi %1, %c0_i32 : i32
    %c0_i32_0 = arith.constant 0 : i32
    %c0_i32_1 = arith.constant 0 : i32
    return %2, %c0_i32_0 : i32, i32
  }
  func.func @transform_1(%arg0: i32, %arg1: i32) -> (i32, i32) {
    %c1_i32 = arith.constant 1 : i32
    %0 = arith.muli %arg0, %c1_i32 : i32
    %1 = arith.addi %0, %arg1 : i32
    %c0_i32 = arith.constant 0 : i32
    %2 = arith.minsi %1, %c0_i32 : i32
    %c0_i32_0 = arith.constant 0 : i32
    %c0_i32_1 = arith.constant 0 : i32
    return %2, %c0_i32_0 : i32, i32
  }
  func.func @transform_2(%arg0: i32, %arg1: i32) -> (i32, i32, i32) {
    %c0_i32 = arith.constant 0 : i32
    %c0_i32_0 = arith.constant 0 : i32
    %c0_i32_1 = arith.constant 0 : i32
    return %arg0, %c0_i32, %c0_i32_0 : i32, i32, i32
  }
}

</mosaic_0001>

<bundles_post_ra>
// kernel: tpu_custom_call.1
= control target key start
LH: loop header
LB: loop body
LE: loop exit
PB: predicated region body
PF: predicated region fallthrough
CT: control target
= control target key end

     0   :  { %7 = vsyncpa [#allocation4], 0  ;;  %s225_s0 = inlined_call_operand.hbm [shape: f32[8,32], index: 0, kind: input, shape index: {}]   ;;  %s226_s1 = inlined_call_operand.hbm [shape: f32[8,32], index: 1, kind: input, shape index: {}]   ;;  %s227_s2 = inlined_call_operand.hbm [shape: f32[1,8,128], index: 2, kind: output, shape index: {}]  }
   0x1   :  { %8 = vsyncpa [#allocation7], 0 }
   0x2   :  { %9 = vsyncpa [#allocation5], 0  ;;  %s194_s9 = smov [#allocation3]   ;;  %s195_s11 = smov [#allocation6]  }
   0x3   :  { %s21_s10 = sshll.u32 %s194_s9, 4  ;;  %s36_s12 = sshll.u32 %s195_s11, 4  ;;  %s22_s10 = int_to_ptr.vmem [resolvable:$true] %s21_s10  ;;  %s37_s12 = int_to_ptr.vmem [resolvable:$true] %s36_s12 }
   0x4   :  { %s136_s13 = scalar_lea.vmem %s22_s10, 128  ;;  %p141_p1 = scmp.lt.s32.totalorder %s22_s10, %s22_s10 }
   0x5   :  { %p137_p0 = scmp.ne.s32.totalorder %s22_s10, %s136_s13  ;;  %p142_p2 = scmp.lt.s32.totalorder %s136_s13, %s136_s13 }
   0x7   :  { %p143_p3 = por %p142_p2, %p141_p1 }
   0x9   :  { %p144_p4 = pnand %p143_p3, %p137_p0 }
   0xb   :  { %147 = shalt.err (!%p144_p4)
}
   0xc   :  { %24 = dma.hbm_to_vmem [thread:$0]  %s225_s0, 128, %s22_s10, [#allocation4]  }
   0xd   :  { %s156_s16 = scalar_lea.vmem %s37_s12, 128  ;;  %p161_p6 = scmp.lt.s32.totalorder %s37_s12, %s37_s12 }
   0xe   :  { %p157_p5 = scmp.ne.s32.totalorder %s37_s12, %s156_s16  ;;  %p162_p7 = scmp.lt.s32.totalorder %s156_s16, %s156_s16 }
  0x10   :  { %p163_p8 = por %p162_p7, %p161_p6 }
  0x12   :  { %p164_p9 = pnand %p163_p8, %p157_p5 }
  0x14   :  { %167 = shalt.err (!%p164_p9)
}
  0x15   :  { %39 = dma.hbm_to_vmem [thread:$0]  %s226_s1, 128, %s37_s12, [#allocation7]  }
  0x16   :  { %188 = dma.done.wait [#allocation4], 128  }
  0x17   :  { %189 = vsyncadd [#allocation4], 4294967168 }
  0x18   :  { %190 = dma.done.wait [#allocation7], 128  }
  0x19   :  { %191 = vsyncadd [#allocation7], 4294967168  ;;  %v58_v0 = vld [vmem:[#allocation3] sm:$0xff]  ;;  %v59_v1 = vld [vmem:[#allocation6] sm:$0xff]  ;;  %vm61_vm0 = vcmask 261120   ;;  %vm68_vm1 = vcmask 7168   ;;  %v89_v20 = vlaneseq }
  0x1a   :  { %v60_v2 = vmul.f32 %v59_v1, %v58_v0  ;;  %vm56_vm2 = vcmask 0   ;;  %v196_v8 = vmov 0.0   ;;  %v197_v9 = vmov 0   ;;  %s198_s1 = smov [#allocation8]  }
  0x1b   :  { %57 = vst.msk [vmem:[#allocation2] sm:$0x1] %vm56_vm2, %v196_v8  ;;  %126 = vset.pattern.permute.xlu1 %v197_v9  ;;  %127 = vset.pattern.permute.xlu0 %v197_v9  ;;  %v90_v21 = vshrl.u32 %v89_v20, 7  ;;  %s104_s19 = sshll.u32 %s198_s1, 4  ;;  %s105_s19 = int_to_ptr.vmem [resolvable:$true] %s104_s19 }
  0x1c   :  { %v62_v3 = vsel %vm61_vm0, %v60_v2, 0.0  ;;  %s168_s20 = scalar_lea.vmem %s105_s19, 128  ;;  %p173_p11 = scmp.lt.s32.totalorder %s105_s19, %s105_s19 }
  0x1d   :  { %63 = vadd.xlane.f32.xlu0 %v62_v3  ;;  %v91_v22 = vsub.s32 0, %v90_v21  ;;  %p169_p10 = scmp.ne.s32.totalorder %s105_s19, %s168_s20  ;;  %p174_p12 = scmp.lt.s32.totalorder %s168_s20, %s168_s20 }
  0x1f   :  { %p175_p13 = por %p174_p12, %p173_p11 }
  0x21   :  { %p176_p0 = pnand %p175_p13, %p169_p10 }
  0x22   :  { %v67_v17 = vld [vmem:[#allocation2] sm:$0x1] }
  0xa6   :  { %v64_v4 = vpop.xlane.xlu0 %63 }
  0xa7   :  { %v118_v5 = vadd.f32 -1.0, %v64_v4 }
  0xa9   :  { %v66_v6 = vmul.f32 %v118_v5, %v118_v5 }
  0xab   :  { %v69_v7 = vsel %vm68_vm1, %v66_v6, 0.0 }
  0xac   :  { %70 = vadd.xlane.f32.xlu0 %v69_v7 }
 0x135   :  { %v71_v10 = vpop.xlane.xlu0 %70 }
 0x136   :  { %v72_v11 = vrot.slane %v71_v10, 4 }
 0x138   :  { %v73_v12 = vadd.f32 %v72_v11, %v71_v10 }
 0x13a   :  { %v74_v13 = vrot.slane %v73_v12, 2 }
 0x13c   :  { %v75_v14 = vadd.f32 %v74_v13, %v73_v12 }
 0x13e   :  { %v76_v15 = vrot.slane %v75_v14, 1 }
 0x140   :  { %v77_v16 = vadd.f32 %v76_v15, %v75_v14 }
 0x142   :  { %119 = vpush %v77_v16 }
 0x173   :  { %s120_s0 = spop %119 }
 0x174   :  { %v79_v18 = vstv %s120_s0 }
 0x175   :  { %v80_v19 = vadd.f32 %v79_v18, %v67_v17 }
 0x177   :  { %82 = vst.msk [vmem:[#allocation2] sm:$0x1] %vm56_vm2, %v80_v19 }
 0x17e   :  { %v86_v23 = vld [vmem:[#allocation2] sm:$0x1] }
 0x17f   :  { %v87_v24 = vmul.f32 0.0625, %v86_v23 }
 0x181   :  { %v92_v25 = vrot.slane %v87_v24, %v91_v22 }
 0x183   :  { %94 = vperm.xlu1 %126, %v92_v25  }
 0x1fe   :  { %v95_v26 = vpop.permute.xlu1 %94 }
 0x1ff   :  { %97 = vst [vmem:[#allocation8] sm:$0xff] %v95_v26 }
 0x200   :  { %179 = shalt.err (!%p176_p0)
}
 0x201   :  { %107 = dma.vmem_to_hbm [thread:$0]  %s105_s19, 128, %s227_s2, [#allocation5]  }
 0x202   :  { %192 = dma.done.wait [#allocation5], 128  }
 0x203   :  { %193 = vsyncadd [#allocation5], 4294967168 }
 0x204   :  { %111 = vsyncpa [#allocation4], 1 }
 0x205   :  { %112 = vsyncpa [#allocation7], 1 }
 0x206   :  { %113 = vsyncpa [#allocation5], 1 }

</bundles_post_ra>
